<compile_context>
chip_gen: v7x
topology: tpu7x:2x2x1
jax: 0.10.0
libtpu: 0.0.40
codegen_flags: <defaults>
</compile_context>

<pallas_src>
import functools

import jax
import jax.numpy as jnp
from jax.experimental import pallas as pl
from jax.experimental.pallas import tpu as pltpu


def _round_up(v, m):
    return ((v + m - 1) // m) * m


def _vmem_capacity_bytes():
    """Per-core VMEM capacity, chip-aware (64 MiB on v7x, 128 MiB on v5e/v6e)."""
    try:
        return int(pltpu.get_tpu_info().vmem_capacity_bytes)
    except Exception:
        try:
            kind = jax.devices()[0].device_kind.lower()
        except Exception:
            kind = ""
        return 64 * 1024 * 1024 if "v7" in kind else 128 * 1024 * 1024


def _mlp_kernel(n_layers, *refs):
    """Fused MLP forward on one batch tile: (Linear -> ReLU) * n_hidden, then Linear.

    refs = (x_ref, w0, b0, w1, b1, ..., w_out, b_out, o_ref)
    Weights/biases use a constant index_map so they are DMA'd once and stay
    VMEM-resident across grid steps; only the x / out batch tiles are streamed
    (software-pipelined HBM<->VMEM DMA overlaps compute on the previous tile).
    """
    x_ref = refs[0]
    o_ref = refs[-1]
    wb = refs[1:-1]

    # MXU operands run in the weights' dtype (bf16 on v6e/v7x when prepared that
    # way); accumulation, bias add and ReLU stay in f32.
    compute_dtype = wb[0].dtype
    h = x_ref[...].astype(compute_dtype)
    for i in range(n_layers):
        w_ref = wb[2 * i]
        b_ref = wb[2 * i + 1]
        acc = jnp.dot(h, w_ref[...], preferred_element_type=jnp.float32)
        acc = acc + b_ref[...].astype(jnp.float32)          # bias [1, out] broadcast
        if i < n_layers - 1:
            acc = jnp.maximum(acc, 0.0)                     # ReLU on hidden layers only
            h = acc.astype(compute_dtype)                   # narrow operand for next MXU pass
        else:
            # TODO(synk): dropout_prob=None (eval semantics); training-mode dropout
            # would need pltpu.prng_seed + pltpu.stateful_bernoulli here.
            o_ref[...] = acc.astype(o_ref.dtype)


def prepare_mlp_params(params, compute_dtype=None):
    """One-time parameter prep, hoisted out of the per-call forward path.

    Pads every *output* feature dim up to a 128-lane multiple (zero padding is
    exact: 0-weight / 0-bias columns stay 0 through ReLU and contribute nothing
    downstream) and optionally casts the weights to `compute_dtype`
    (jnp.bfloat16 recommended on v6e/v7x: MXU peak is bf16 and it halves the
    resident weight VMEM). Biases stay in their original (f32) dtype.
    The *input* feature dim (first layer K) is intentionally NOT padded so x is
    never copied/padded along features in HBM; lane padding happens in vregs.

    params: list of (W [in, out], b [1, out]) — hidden layers then output layer.
    Returns (layers, out_features) to pass to mlp_forward.
    """
    out_features = params[-1][0].shape[1]
    layers = []
    prev_pad = params[0][0].shape[0]            # first K == in_dim, unpadded
    for w, b in params:
        k, n = w.shape
        kp, np_ = prev_pad, _round_up(n, 128)
        w_p = jnp.pad(w, ((0, kp - k), (0, np_ - n)))
        b_p = jnp.pad(b, ((0, 0), (0, np_ - b.shape[1])))
        if compute_dtype is not None:
            w_p = w_p.astype(compute_dtype)
        layers.append((w_p, b_p))
        prev_pad = np_
    return layers, out_features


def mlp_forward(x, prepped, *, batch_tile=512):
    """x: [B, in_dim]; prepped: output of prepare_mlp_params."""
    layers, out_features = prepped
    B, in_dim = x.shape
    assert layers[0][0].shape[0] == in_dim, (layers[0][0].shape, in_dim)
    n_layers = len(layers)
    out_pad = layers[-1][0].shape[1]
    hidden_pads = [w.shape[1] for w, _ in layers]

    x_itemsize = jnp.dtype(x.dtype).itemsize
    w_itemsize = jnp.dtype(layers[0][0].dtype).itemsize

    # Constant index_map avoids re-DMA, but the default pipeline still allocates
    # two buffers per input -> count the weights/biases twice.
    w_bytes = sum(w.size * w.dtype.itemsize + b.size * b.dtype.itemsize
                  for w, b in layers)
    max_pad = max(hidden_pads)
    in_lane_pad = _round_up(in_dim, 128)        # x tile occupies lane-padded vregs

    def _vmem_estimate(t):
        io = 2 * t * (in_lane_pad + out_pad) * x_itemsize      # double-buffered x/out tiles
        live = t * max_pad * (w_itemsize + 2 * 4)              # h (compute dtype) + f32 accs
        return 2 * w_bytes + io + live

    cap = _vmem_capacity_bytes()
    budget = int(0.65 * cap)                    # ~42 MiB on v7x, ~83 MiB on v5e/v6e
    vmem_limit = int(0.85 * cap)                # headroom for Mosaic scratch / semaphores

    b_r8 = _round_up(B, 8)
    tb = _round_up(min(batch_tile, b_r8), 8)
    # v7x has 2 TensorCores: give the "parallel" batch axis >= 2 tiles when the
    # batch is large enough for each tile to still feed the MXU well.
    if b_r8 >= 256:
        tb = min(tb, _round_up((b_r8 + 1) // 2, 8))
    # Shrink floor of 128 rows (MXU streaming dim); shed memory with bf16 weights
    # (prepare_mlp_params(compute_dtype=jnp.bfloat16)) before going any lower.
    tb_floor = min(tb, 128)
    while tb > tb_floor and _vmem_estimate(tb) > budget:
        tb = max(tb_floor, _round_up(tb // 2, 8))
    # TODO(synk): if 2*w_bytes alone exceeds the budget (very wide MLP), a K/N
    # reduction grid with an f32 accumulator scratch would be needed; typical
    # DKL MLP widths fit comfortably VMEM-resident.

    b_pad = _round_up(B, tb)
    x_p = x if b_pad == B else jnp.pad(x, ((0, b_pad - B), (0, 0)))

    flat_args = [x_p]
    # x keeps its true feature width (block dim == full array dim is legal), so
    # there is no per-call feature-padded HBM copy of x.
    in_specs = [pl.BlockSpec((tb, in_dim), lambda i: (i, 0))]
    for w_p, b_p in layers:
        ip, op = w_p.shape
        flat_args += [w_p, b_p]
        in_specs += [pl.BlockSpec((ip, op), lambda i: (0, 0)),
                     pl.BlockSpec((1, op), lambda i: (0, 0))]

    kernel = functools.partial(_mlp_kernel, n_layers)
    out_p = pl.pallas_call(
        kernel,
        out_shape=jax.ShapeDtypeStruct((b_pad, out_pad), x.dtype),
        grid=(b_pad // tb,),
        in_specs=in_specs,
        out_specs=pl.BlockSpec((tb, out_pad), lambda i: (i, 0)),
        compiler_params=pltpu.CompilerParams(
            dimension_semantics=("parallel",),   # batch tiles independent -> both TCs on v7x
            vmem_limit_bytes=vmem_limit,
        ),
    )(*flat_args)
    return out_p[:B, :out_features]


def init_mlp_params(key, input_size, hidden_layer_sizes, output_size):
    """Deterministic init mirroring torch.nn.Linear default (U(-1/sqrt(fan_in), +))."""
    sizes = [input_size] + list(hidden_layer_sizes) + [output_size]
    params = []
    for i in range(len(sizes) - 1):
        fan_in, fan_out = sizes[i], sizes[i + 1]
        key, kw, kb = jax.random.split(key, 3)
        bound = 1.0 / (fan_in ** 0.5)
        w = jax.random.uniform(kw, (fan_in, fan_out), jnp.float32, -bound, bound)
        b = jax.random.uniform(kb, (1, fan_out), jnp.float32, -bound, bound)
        params.append((w, b))
    return params


def mlp_reference(x, params):
    h = x
    n = len(params)
    for i, (w, b) in enumerate(params):
        h = h @ w + b
        if i < n - 1:
            h = jnp.maximum(h, 0.0)
    return h


if __name__ == "__main__":
    key = jax.random.PRNGKey(0)
    batch = 8
    input_size = 16
    hidden_layer_sizes = [32, 32]
    output_size = 4

    key, kx = jax.random.split(key)
    x = jax.random.normal(kx, (batch, input_size), jnp.float32)
    params = init_mlp_params(key, input_size, hidden_layer_sizes, output_size)

    # f32 path (exact vs reference).
    prepped = prepare_mlp_params(params)
    out = jax.block_until_ready(mlp_forward(x, prepped))
    ref = mlp_reference(x, params)
    assert out.shape == (batch, output_size), out.shape
    assert jnp.allclose(out, ref, atol=1e-5, rtol=1e-5), "mismatch vs reference"

    # Non-aligned batch with >1 grid step (exercises batch pipelining, padding
    # mask-off, and the parallel grid axis).
    key, kx2 = jax.random.split(key)
    x2 = jax.random.normal(kx2, (300, input_size), jnp.float32)
    out2 = jax.block_until_ready(mlp_forward(x2, prepped, batch_tile=128))
    ref2 = mlp_reference(x2, params)
    assert out2.shape == (300, output_size), out2.shape
    assert jnp.allclose(out2, ref2, atol=1e-5, rtol=1e-5), "mismatch vs reference (gridded)"

    # bf16-MXU path (recommended on v6e/v7x): bf16 operands, f32 accumulation,
    # looser tolerance vs the f32 reference.
    prepped_bf16 = prepare_mlp_params(params, compute_dtype=jnp.bfloat16)
    out3 = jax.block_until_ready(mlp_forward(x2, prepped_bf16, batch_tile=128))
    assert out3.shape == (300, output_size), out3.shape
    assert jnp.allclose(out3, ref2, atol=0.1, rtol=0.1), "mismatch vs reference (bf16)"

    print("KERNEL_OK")
</pallas_src>

<mosaic_0001>
module attributes {stable_mosaic.version = 11 : i64} {
  func.func @_mlp_kernel(%arg0: i32, %arg1: memref<8x16xf32, #tpu.memory_space<vmem>>, %arg2: memref<16x128xf32, #tpu.memory_space<vmem>>, %arg3: memref<1x128xf32, #tpu.memory_space<vmem>>, %arg4: memref<128x128xf32, #tpu.memory_space<vmem>>, %arg5: memref<1x128xf32, #tpu.memory_space<vmem>>, %arg6: memref<128x128xf32, #tpu.memory_space<vmem>>, %arg7: memref<1x128xf32, #tpu.memory_space<vmem>>, %arg8: memref<8x128xf32, #tpu.memory_space<vmem>>) attributes {dimension_semantics = [#tpu.dimension_semantics<parallel>], iteration_bounds = array<i64: 1>, scalar_prefetch = 0 : i64, scratch_operands = 0 : i64, tpu.core_type = #tpu.core_type<tc>, window_params = [{transform_indices = @transform_0, window_bounds = array<i64: 8, 16>}, {pipeline_mode = #tpu.pipeline_mode<synchronous>, transform_indices = @transform_1, window_bounds = array<i64: 16, 128>}, {pipeline_mode = #tpu.pipeline_mode<synchronous>, transform_indices = @transform_2, window_bounds = array<i64: 1, 128>}, {pipeline_mode = #tpu.pipeline_mode<synchronous>, transform_indices = @transform_3, window_bounds = array<i64: 128, 128>}, {pipeline_mode = #tpu.pipeline_mode<synchronous>, transform_indices = @transform_4, window_bounds = array<i64: 1, 128>}, {pipeline_mode = #tpu.pipeline_mode<synchronous>, transform_indices = @transform_5, window_bounds = array<i64: 128, 128>}, {pipeline_mode = #tpu.pipeline_mode<synchronous>, transform_indices = @transform_6, window_bounds = array<i64: 1, 128>}, {transform_indices = @transform_7, window_bounds = array<i64: 8, 128>}]} {
    %c0 = arith.constant 0 : index
    %c0_0 = arith.constant 0 : index
    %0 = vector.load %arg1[%c0, %c0_0] : memref<8x16xf32, #tpu.memory_space<vmem>>, vector<8x16xf32>
    %c0_1 = arith.constant 0 : index
    %c0_2 = arith.constant 0 : index
    %1 = vector.load %arg2[%c0_1, %c0_2] : memref<16x128xf32, #tpu.memory_space<vmem>>, vector<16x128xf32>
    %cst = arith.constant dense<0.000000e+00> : vector<8x128xf32>
    %2 = tpu.matmul %0, %1, %cst {dimension_numbers = #tpu.dot_dimension_numbers<[1], [0], [0], [1], [0, 0, 1, 1], [], []>} : vector<8x16xf32>, vector<16x128xf32>, vector<8x128xf32> -> vector<8x128xf32>
    %c0_3 = arith.constant 0 : index
    %c0_4 = arith.constant 0 : index
    %3 = vector.load %arg3[%c0_3, %c0_4] : memref<1x128xf32, #tpu.memory_space<vmem>>, vector<1x128xf32>
    %4 = vector.broadcast %3 : vector<1x128xf32> to vector<8x128xf32>
    %5 = arith.addf %2, %4 : vector<8x128xf32>
    %cst_5 = arith.constant 0.000000e+00 : f32
    %6 = vector.broadcast %cst_5 : f32 to vector<8x128xf32>
    %7 = arith.maximumf %5, %6 : vector<8x128xf32>
    %c0_6 = arith.constant 0 : index
    %c0_7 = arith.constant 0 : index
    %8 = vector.load %arg4[%c0_6, %c0_7] : memref<128x128xf32, #tpu.memory_space<vmem>>, vector<128x128xf32>
    %cst_8 = arith.constant dense<0.000000e+00> : vector<8x128xf32>
    %9 = tpu.matmul %7, %8, %cst_8 {dimension_numbers = #tpu.dot_dimension_numbers<[1], [0], [0], [1], [0, 0, 1, 1], [], []>} : vector<8x128xf32>, vector<128x128xf32>, vector<8x128xf32> -> vector<8x128xf32>
    %c0_9 = arith.constant 0 : index
    %c0_10 = arith.constant 0 : index
    %10 = vector.load %arg5[%c0_9, %c0_10] : memref<1x128xf32, #tpu.memory_space<vmem>>, vector<1x128xf32>
    %11 = vector.broadcast %10 : vector<1x128xf32> to vector<8x128xf32>
    %12 = arith.addf %9, %11 : vector<8x128xf32>
    %cst_11 = arith.constant 0.000000e+00 : f32
    %13 = vector.broadcast %cst_11 : f32 to vector<8x128xf32>
    %14 = arith.maximumf %12, %13 : vector<8x128xf32>
    %c0_12 = arith.constant 0 : index
    %c0_13 = arith.constant 0 : index
    %15 = vector.load %arg6[%c0_12, %c0_13] : memref<128x128xf32, #tpu.memory_space<vmem>>, vector<128x128xf32>
    %cst_14 = arith.constant dense<0.000000e+00> : vector<8x128xf32>
    %16 = tpu.matmul %14, %15, %cst_14 {dimension_numbers = #tpu.dot_dimension_numbers<[1], [0], [0], [1], [0, 0, 1, 1], [], []>} : vector<8x128xf32>, vector<128x128xf32>, vector<8x128xf32> -> vector<8x128xf32>
    %c0_15 = arith.constant 0 : index
    %c0_16 = arith.constant 0 : index
    %17 = vector.load %arg7[%c0_15, %c0_16] : memref<1x128xf32, #tpu.memory_space<vmem>>, vector<1x128xf32>
    %18 = vector.broadcast %17 : vector<1x128xf32> to vector<8x128xf32>
    %19 = arith.addf %16, %18 : vector<8x128xf32>
    %c0_17 = arith.constant 0 : index
    %c0_18 = arith.constant 0 : index
    %20 = vector.load %arg8[%c0_17, %c0_18] : memref<8x128xf32, #tpu.memory_space<vmem>>, vector<8x128xf32>
    tpu.vector_store %arg8[%c0_17, %c0_18], %19 {strides = array<i32>} : memref<8x128xf32, #tpu.memory_space<vmem>>, vector<8x128xf32>,
    return
  }
  func.func @transform_0(%arg0: i32) -> (i32, i32) {
    %c0_i32 = arith.constant 0 : i32
    %c0_i32_0 = arith.constant 0 : i32
    return %arg0, %c0_i32 : i32, i32
  }
  func.func @transform_1(%arg0: i32) -> (i32, i32) {
    %c0_i32 = arith.constant 0 : i32
    %c0_i32_0 = arith.constant 0 : i32
    %c0_i32_1 = arith.constant 0 : i32
    return %c0_i32, %c0_i32_0 : i32, i32
  }
  func.func @transform_2(%arg0: i32) -> (i32, i32) {
    %c0_i32 = arith.constant 0 : i32
    %c0_i32_0 = arith.constant 0 : i32
    %c0_i32_1 = arith.constant 0 : i32
    return %c0_i32, %c0_i32_0 : i32, i32
  }
  func.func @transform_3(%arg0: i32) -> (i32, i32) {
    %c0_i32 = arith.constant 0 : i32
    %c0_i32_0 = arith.constant 0 : i32
    %c0_i32_1 = arith.constant 0 : i32
    return %c0_i32, %c0_i32_0 : i32, i32
  }
  func.func @transform_4(%arg0: i32) -> (i32, i32) {
    %c0_i32 = arith.constant 0 : i32
    %c0_i32_0 = arith.constant 0 : i32
    %c0_i32_1 = arith.constant 0 : i32
    return %c0_i32, %c0_i32_0 : i32, i32
  }
  func.func @transform_5(%arg0: i32) -> (i32, i32) {
    %c0_i32 = arith.constant 0 : i32
    %c0_i32_0 = arith.constant 0 : i32
    %c0_i32_1 = arith.constant 0 : i32
    return %c0_i32, %c0_i32_0 : i32, i32
  }
  func.func @transform_6(%arg0: i32) -> (i32, i32) {
    %c0_i32 = arith.constant 0 : i32
    %c0_i32_0 = arith.constant 0 : i32
    %c0_i32_1 = arith.constant 0 : i32
    return %c0_i32, %c0_i32_0 : i32, i32
  }
  func.func @transform_7(%arg0: i32) -> (i32, i32) {
    %c0_i32 = arith.constant 0 : i32
    %c0_i32_0 = arith.constant 0 : i32
    return %arg0, %c0_i32 : i32, i32
  }
}

</mosaic_0001>

<bundles_post_ra>
// kernel: tpu_custom_call.1
= control target key start
LH: loop header
LB: loop body
LE: loop exit
PB: predicated region body
PF: predicated region fallthrough
CT: control target
= control target key end

     0   :  { %12 = vsyncpa [#allocation3], 0  ;;  %s951_s0 = inlined_call_operand.hbm [shape: f32[8,16], index: 0, kind: input, shape index: {}]   ;;  %s952_s1 = inlined_call_operand.hbm [shape: f32[16,128], index: 1, kind: input, shape index: {}]   ;;  %s953_s2 = inlined_call_operand.hbm [shape: f32[1,128], index: 2, kind: input, shape index: {}]   ;;  %s954_s3 = inlined_call_operand.hbm [shape: f32[128,128], index: 3, kind: input, shape index: {}]   ;;  %s955_s4 = inlined_call_operand.hbm [shape: f32[1,128], index: 4, kind: input, shape index: {}]   ;;  %s956_s5 = inlined_call_operand.hbm [shape: f32[128,128], index: 5, kind: input, shape index: {}]   ;;  %s957_s6 = inlined_call_operand.hbm [shape: f32[1,128], index: 6, kind: input, shape index: {}]   ;;  %s958_s7 = inlined_call_operand.hbm [shape: f32[8,128], index: 7, kind: output, shape index: {}]  }
   0x1   :  { %13 = vsyncpa [#allocation6], 0 }
   0x2   :  { %14 = vsyncpa [#allocation9], 0 }
   0x3   :  { %15 = vsyncpa [#allocation12], 0 }
   0x4   :  { %16 = vsyncpa [#allocation4], 0  ;;  %s773_s24 = smov [#allocation5]   ;;  %s587_s28 = scalar_lea.hbm %s952_s1, 256 }
   0x5   :  { %s32_s25 = sshll.u32 %s773_s24, 4  ;;  %p588_p0 = scmp.ne.s32.totalorder %s952_s1, %s587_s28  ;;  %s33_s25 = int_to_ptr.vmem [resolvable:$true] %s32_s25 }
   0x6   :  { %p591_p1 = scmp.lt.u32.totalorder %s587_s28, %s952_s1 }
   0x8   :  { %p593_p2 = pnand %p591_p1, %p588_p0 }
   0xa   :  { %596 = shalt.err (!%p593_p2)
}
   0xb   :  { %s597_s10 = scalar_lea.vmem %s33_s25, 256  ;;  %p602_p4 = scmp.lt.s32.totalorder %s33_s25, %s33_s25 }
   0xc   :  { %p598_p3 = scmp.ne.s32.totalorder %s33_s25, %s597_s10  ;;  %p603_p5 = scmp.lt.s32.totalorder %s597_s10, %s597_s10 }
   0xe   :  { %p604_p6 = por %p603_p5, %p602_p4 }
  0x10   :  { %p605_p7 = pnand %p604_p6, %p598_p3 }
  0x12   :  { %608 = shalt.err (!%p605_p7)
}
  0x13   :  { %s774_s11 = smov 128   ;;  %s775_s12 = smov 8  }
  0x14   :  { %38 = dma.hbm_to_vmem [thread:$0]  %s952_s1, 256, %s33_s25, [#allocation6], %s774_s11, %s774_s11, %s775_s12  }
  0x15   :  { %s776_s15 = smov [#allocation8]   ;;  %s777_s17 = smov [#allocation11]  }
  0x16   :  { %s54_s16 = sshll.u32 %s776_s15, 4  ;;  %s76_s18 = sshll.u32 %s777_s17, 4  ;;  %s55_s16 = int_to_ptr.vmem [resolvable:$true] %s54_s16  ;;  %s77_s18 = int_to_ptr.vmem [resolvable:$true] %s76_s18 }
  0x17   :  { %s609_s21 = scalar_lea.hbm %s954_s3, 2048 }
  0x18   :  { %p610_p8 = scmp.ne.s32.totalorder %s954_s3, %s609_s21  ;;  %p613_p9 = scmp.lt.u32.totalorder %s609_s21, %s954_s3 }
  0x1a   :  { %p615_p10 = pnand %p613_p9, %p610_p8 }
  0x1c   :  { %618 = shalt.err (!%p615_p10)
}
  0x1d   :  { %s619_s1 = scalar_lea.vmem %s55_s16, 2048  ;;  %p624_p12 = scmp.lt.s32.totalorder %s55_s16, %s55_s16 }
  0x1e   :  { %p620_p11 = scmp.ne.s32.totalorder %s55_s16, %s619_s1  ;;  %p625_p13 = scmp.lt.s32.totalorder %s619_s1, %s619_s1 }
  0x20   :  { %p626_p0 = por %p625_p13, %p624_p12 }
  0x22   :  { %p627_p1 = pnand %p626_p0, %p620_p11 }
  0x24   :  { %630 = shalt.err (!%p627_p1)
}
  0x25   :  { %60 = dma.hbm_to_vmem [thread:$0]  %s954_s3, 2048, %s55_s16, [#allocation9], %s774_s11, %s774_s11, %s775_s12  }
  0x26   :  { %s631_s30 = scalar_lea.hbm %s956_s5, 2048 }
  0x27   :  { %p632_p2 = scmp.ne.s32.totalorder %s956_s5, %s631_s30  ;;  %p635_p3 = scmp.lt.u32.totalorder %s631_s30, %s956_s5 }
  0x29   :  { %p637_p4 = pnand %p635_p3, %p632_p2 }
  0x2b   :  { %640 = shalt.err (!%p637_p4)
}
  0x2c   :  { %s641_s14 = scalar_lea.vmem %s77_s18, 2048  ;;  %p646_p6 = scmp.lt.s32.totalorder %s77_s18, %s77_s18 }
  0x2d   :  { %p642_p5 = scmp.ne.s32.totalorder %s77_s18, %s641_s14  ;;  %p647_p7 = scmp.lt.s32.totalorder %s641_s14, %s641_s14 }
  0x2f   :  { %p648_p8 = por %p647_p7, %p646_p6 }
  0x31   :  { %p649_p9 = pnand %p648_p8, %p642_p5 }
  0x33   :  { %652 = shalt.err (!%p649_p9)
}
  0x34   :  { %82 = dma.hbm_to_vmem [thread:$0]  %s956_s5, 2048, %s77_s18, [#allocation12], %s774_s11, %s774_s11, %s775_s12  }
  0x35   :  { %s778_s16 = smov [#allocation2]   ;;  %s779_s19 = smov [#allocation7]  }
  0x36   :  { %s23_s17 = sshll.u32 %s778_s16, 4  ;;  %s45_s20 = sshll.u32 %s779_s19, 4  ;;  %s24_s17 = int_to_ptr.vmem [resolvable:$true] %s23_s17  ;;  %s46_s20 = int_to_ptr.vmem [resolvable:$true] %s45_s20 }
  0x37   :  { %s653_s23 = scalar_lea.hbm %s951_s0, 128 }
  0x38   :  { %p654_p10 = scmp.ne.s32.totalorder %s951_s0, %s653_s23  ;;  %p657_p11 = scmp.lt.u32.totalorder %s653_s23, %s951_s0 }
  0x3a   :  { %p659_p12 = pnand %p657_p11, %p654_p10 }
  0x3c   :  { %662 = shalt.err (!%p659_p12)
}
  0x3d   :  { %s663_s5 = scalar_lea.vmem %s24_s17, 128  ;;  %p668_p0 = scmp.lt.s32.totalorder %s24_s17, %s24_s17 }
  0x3e   :  { %p664_p13 = scmp.ne.s32.totalorder %s24_s17, %s663_s5  ;;  %p669_p1 = scmp.lt.s32.totalorder %s663_s5, %s663_s5 }
  0x40   :  { %p670_p2 = por %p669_p1, %p668_p0 }
  0x42   :  { %p671_p3 = pnand %p670_p2, %p664_p13 }
  0x44   :  { %674 = shalt.err (!%p671_p3)
}
  0x45   :  { %26 = dma.hbm_to_vmem [thread:$0]  %s951_s0, 128, %s24_s17, [#allocation3]  }
  0x46   :  { %s675_s28 = scalar_lea.hbm %s953_s2, 16 }
  0x47   :  { %p676_p4 = scmp.ne.s32.totalorder %s953_s2, %s675_s28  ;;  %p679_p5 = scmp.lt.u32.totalorder %s675_s28, %s953_s2 }
  0x49   :  { %p681_p6 = pnand %p679_p5, %p676_p4 }
  0x4b   :  { %684 = shalt.err (!%p681_p6)
}
  0x4c   :  { %s685_s10 = scalar_lea.vmem %s46_s20, 16  ;;  %s689_s13 = scalar_lea.vmem %s46_s20, 32 }
  0x4d   :  { %p686_p7 = scmp.ne.s32.totalorder %s46_s20, %s685_s10  ;;  %p690_p8 = scmp.lt.s32.totalorder %s46_s20, %s46_s20 }
  0x4e   :  { %p691_p9 = scmp.lt.s32.totalorder %s689_s13, %s685_s10 }
  0x50   :  { %p692_p10 = por %p691_p9, %p690_p8 }
  0x52   :  { %p693_p11 = pnand %p692_p10, %p686_p7 }
  0x54   :  { %696 = shalt.err (!%p693_p11)
}
  0x55   :  { %48 = dma.hbm_to_vmem [thread:$0]  %s953_s2, 16, %s46_s20, [#allocation6]  }
  0x56   :  { %s780_s3 = smov [#allocation10]   ;;  %s781_s16 = smov [#allocation13]  }
  0x57   :  { %s67_s15 = sshll.u32 %s780_s3, 4  ;;  %s89_s17 = sshll.u32 %s781_s16, 4  ;;  %s68_s15 = int_to_ptr.vmem [resolvable:$true] %s67_s15  ;;  %s90_s17 = int_to_ptr.vmem [resolvable:$true] %s89_s17 }
  0x58   :  { %s697_s22 = scalar_lea.hbm %s955_s4, 16 }
  0x59   :  { %p698_p12 = scmp.ne.s32.totalorder %s955_s4, %s697_s22  ;;  %p701_p13 = scmp.lt.u32.totalorder %s697_s22, %s955_s4 }
  0x5b   :  { %p703_p0 = pnand %p701_p13, %p698_p12 }
  0x5d   :  { %706 = shalt.err (!%p703_p0)
}
  0x5e   :  { %s707_s2 = scalar_lea.vmem %s68_s15, 16  ;;  %s711_s20 = scalar_lea.vmem %s68_s15, 32 }
  0x5f   :  { %p708_p1 = scmp.ne.s32.totalorder %s68_s15, %s707_s2  ;;  %p712_p2 = scmp.lt.s32.totalorder %s68_s15, %s68_s15 }
  0x60   :  { %p713_p3 = scmp.lt.s32.totalorder %s711_s20, %s707_s2 }
  0x62   :  { %p714_p4 = por %p713_p3, %p712_p2 }
  0x64   :  { %p715_p5 = pnand %p714_p4, %p708_p1 }
  0x66   :  { %718 = shalt.err (!%p715_p5)
}
  0x67   :  { %70 = dma.hbm_to_vmem [thread:$0]  %s955_s4, 16, %s68_s15, [#allocation9]  }
  0x68   :  { %s719_s18 = scalar_lea.hbm %s957_s6, 16 }
  0x69   :  { %p720_p6 = scmp.ne.s32.totalorder %s957_s6, %s719_s18  ;;  %p723_p7 = scmp.lt.u32.totalorder %s719_s18, %s957_s6 }
  0x6b   :  { %p725_p8 = pnand %p723_p7, %p720_p6 }
  0x6d   :  { %728 = shalt.err (!%p725_p8)
}
  0x6e   :  { %s729_s8 = scalar_lea.vmem %s90_s17, 16  ;;  %s733_s9 = scalar_lea.vmem %s90_s17, 32 }
  0x6f   :  { %p730_p9 = scmp.ne.s32.totalorder %s90_s17, %s729_s8  ;;  %p734_p10 = scmp.lt.s32.totalorder %s90_s17, %s90_s17 }
  0x70   :  { %p735_p11 = scmp.lt.s32.totalorder %s733_s9, %s729_s8 }
  0x72   :  { %p736_p12 = por %p735_p11, %p734_p10 }
  0x74   :  { %p737_p13 = pnand %p736_p12, %p730_p9 }
  0x76   :  { %740 = shalt.err (!%p737_p13)
}
  0x77   :  { %92 = dma.hbm_to_vmem [thread:$0]  %s957_s6, 16, %s90_s17, [#allocation12]  }
  0x78   :  { %763 = dma.done.wait [#allocation3], 128  }
  0x79   :  { %764 = vsyncadd [#allocation3], 4294967168 }
  0x7a   :  { %765 = dma.done.wait [#allocation6], 272  }
  0x7b   :  { %766 = vsyncadd [#allocation6], 4294967024 }
  0x7c   :  { %767 = dma.done.wait [#allocation9], 2064  }
  0x7d   :  { %768 = vsyncadd [#allocation9], 4294965232 }
  0x7e   :  { %769 = dma.done.wait [#allocation12], 2064  }
  0x7f   :  { %770 = vsyncadd [#allocation12], 4294965232  ;;  %v782_v0 = vmov 0.0|0.0   ;;  %vm783_vm0 = vmmov 0   ;;  %v784_v1 = vmov 0.0   ;;  %v115_v2 = vld [vmem:[#allocation5] sm:$0xff] }
  0x80   :  { %523 = vmatprep.subr.bf16.mxu0 %v782_v0  ;;  %450 = vmatprep.mubr.msk.f32.mxu0 %vm783_vm0, %v784_v1  ;;  %v116_v3 = vld [vmem:[#allocation5 + $0x8] sm:$0xff]  ;;  %v199_v5 = vld [vmem:[#allocation8] sm:$0xff]  ;;  %v200_v6 = vld [vmem:[#allocation8 + $0x8] sm:$0xff]  ;;  %vm124_vm1 = vcmask 130048   ;;  %s785_s6 = smov [#allocation14]  }
  0x81   :  { %526 = vmatprep.subr.bf16.mxu1 %v782_v0  ;;  %485 = vmatprep.mubr.msk.f32.mxu1 %vm783_vm0, %v784_v1  ;;  %v524_v4 = vpack.c.bf16 %v116_v3, %v115_v2  ;;  %v201_v7 = vld [vmem:[#allocation8 + $0x10] sm:$0xff]  ;;  %v527_v8 = vpack.c.bf16 %v200_v6, %v199_v5  ;;  %v202_v9 = vld [vmem:[#allocation8 + $0x18] sm:$0xff]  ;;  %v114_v10 = vld [vmem:[#allocation2] sm:$0xff]  ;;  %s393_s13 = sshll.u32 %s785_s6, 4  ;;  %s394_s13 = int_to_ptr.vmem [resolvable:$true] %s393_s13 }
  0x82   :  { %v530_v11 = vpack.c.bf16 %v202_v9, %v201_v7  ;;  %v203_v12 = vld [vmem:[#allocation8 + $0x20] sm:$0xff]  ;;  %v204_v13 = vld [vmem:[#allocation8 + $0x28] sm:$0xff]  ;;  %v205_v15 = vld [vmem:[#allocation8 + $0x30] sm:$0xff]  ;;  %s741_s0 = scalar_lea.vmem %s394_s13, 128  ;;  %p746_p1 = scmp.lt.s32.totalorder %s394_s13, %s394_s13 }
  0x83   :  { %525 = vmatpush3.bf16.msra.mxu0 %v524_v4  ;;  %528 = vmatpush3.bf16.msra.mxu1 %v527_v8  ;;  %v533_v14 = vpack.c.bf16 %v204_v13, %v203_v12  ;;  %v206_v16 = vld [vmem:[#allocation8 + $0x38] sm:$0xff]  ;;  %v207_v18 = vld [vmem:[#allocation8 + $0x40] sm:$0xff]  ;;  %v208_v19 = vld [vmem:[#allocation8 + $0x48] sm:$0xff]  ;;  %p742_p0 = scmp.ne.s32.totalorder %s394_s13, %s741_s0  ;;  %p747_p2 = scmp.lt.s32.totalorder %s741_s0, %s741_s0 }
  0x84   :  { %550 = vmatprep.subr.bf16.mxu0 %v782_v0  ;;  %529 = vmatprep.subr.bf16.mxu1 %v782_v0  ;;  %v536_v17 = vpack.c.bf16 %v206_v16, %v205_v15  ;;  %v539_v20 = vpack.c.bf16 %v208_v19, %v207_v18  ;;  %v209_v21 = vld [vmem:[#allocation8 + $0x50] sm:$0xff]  ;;  %v210_v22 = vld [vmem:[#allocation8 + $0x58] sm:$0xff]  ;;  %v211_v24 = vld [vmem:[#allocation8 + $0x60] sm:$0xff] }
  0x85   :  { %v542_v23 = vpack.c.bf16 %v210_v22, %v209_v21  ;;  %v212_v25 = vld [vmem:[#allocation8 + $0x68] sm:$0xff]  ;;  %v213_v27 = vld [vmem:[#allocation8 + $0x70] sm:$0xff]  ;;  %v214_v28 = vld [vmem:[#allocation8 + $0x78] sm:$0xff]  ;;  %p748_p3 = por %p747_p2, %p746_p1 }
  0x86   :  { %451 = vmatmul.mubr.msk.f32.vlgmr.msra.gmra.mrb[0].mxu0 %vm124_vm1, %v114_v10  ;;  %v545_v26 = vpack.c.bf16 %v212_v25, %v211_v24  ;;  %v548_v29 = vpack.c.bf16 %v214_v28, %v213_v27  ;;  %v293_v30 = vld [vmem:[#allocation11] sm:$0xff]  ;;  %v294_v31 = vld [vmem:[#allocation11 + $0x8] sm:$0xff]  ;;  %v295_v32 = vld [vmem:[#allocation11 + $0x10] sm:$0xff] }
  0x87   :  { %520 = vmatprep.mubr.msk.f32.mxu0 %vm783_vm0, %v784_v1  ;;  %531 = vmatpush3.bf16.msra.mxu1 %v530_v11  ;;  %v551_v33 = vpack.c.bf16 %v294_v31, %v293_v30  ;;  %v296_v34 = vld [vmem:[#allocation11 + $0x18] sm:$0xff]  ;;  %v297_v36 = vld [vmem:[#allocation11 + $0x20] sm:$0xff]  ;;  %v298_v37 = vld [vmem:[#allocation11 + $0x28] sm:$0xff]  ;;  %p749_p4 = pnand %p748_p3, %p742_p0 }
  0x88   :  { %532 = vmatprep.subr.bf16.mxu1 %v782_v0  ;;  %v554_v35 = vpack.c.bf16 %v296_v34, %v295_v32  ;;  %v557_v38 = vpack.c.bf16 %v298_v37, %v297_v36  ;;  %v299_v39 = vld [vmem:[#allocation11 + $0x30] sm:$0xff]  ;;  %v300_v40 = vld [vmem:[#allocation11 + $0x38] sm:$0xff]  ;;  %v301_v42 = vld [vmem:[#allocation11 + $0x40] sm:$0xff] }
  0x89   :  { %552 = vmatpush3.bf16.msra.mxu0 %v551_v33  ;;  %v560_v41 = vpack.c.bf16 %v300_v40, %v299_v39  ;;  %v302_v43 = vld [vmem:[#allocation11 + $0x48] sm:$0xff]  ;;  %v303_v45 = vld [vmem:[#allocation11 + $0x50] sm:$0xff]  ;;  %v304_v46 = vld [vmem:[#allocation11 + $0x58] sm:$0xff] }
  0x8a   :  { %553 = vmatprep.subr.bf16.mxu0 %v782_v0  ;;  %v563_v44 = vpack.c.bf16 %v302_v43, %v301_v42  ;;  %v566_v47 = vpack.c.bf16 %v304_v46, %v303_v45  ;;  %v305_v48 = vld [vmem:[#allocation11 + $0x60] sm:$0xff]  ;;  %v306_v49 = vld [vmem:[#allocation11 + $0x68] sm:$0xff]  ;;  %v405_v51 = vld [vmem:[#allocation7] ss:$0 sm:$0xff] }
  0x8b   :  { %534 = vmatpush3.bf16.msra.mxu1 %v533_v14  ;;  %v569_v50 = vpack.c.bf16 %v306_v49, %v305_v48  ;;  %v307_v56 = vld [vmem:[#allocation11 + $0x70] sm:$0xff]  ;;  %v308_v57 = vld [vmem:[#allocation11 + $0x78] sm:$0xff]  ;;  %v408_v1 = vld [vmem:[#allocation13] ss:$0 sm:$0xff] }
  0x8c   :  { %535 = vmatprep.subr.bf16.mxu1 %v782_v0  ;;  %v572_v58 = vpack.c.bf16 %v308_v57, %v307_v56  ;;  %v407_v59 = vld [vmem:[#allocation10] ss:$0 sm:$0xff] }
  0x8d   :  { %555 = vmatpush3.bf16.msra.mxu0 %v554_v35 }
  0x8e   :  { %556 = vmatprep.subr.bf16.mxu0 %v782_v0 }
  0x8f   :  { %537 = vmatpush3.bf16.msra.mxu1 %v536_v17 }
  0x90   :  { %538 = vmatprep.subr.bf16.mxu1 %v782_v0 }
  0x91   :  { %558 = vmatpush3.bf16.msra.mxu0 %v557_v38 }
  0x92   :  { %559 = vmatprep.subr.bf16.mxu0 %v782_v0 }
  0x93   :  { %540 = vmatpush3.bf16.msra.mxu1 %v539_v20 }
  0x94   :  { %541 = vmatprep.subr.bf16.mxu1 %v782_v0 }
  0x95   :  { %561 = vmatpush3.bf16.msra.mxu0 %v560_v41 }
  0x96   :  { %562 = vmatprep.subr.bf16.mxu0 %v782_v0 }
  0x97   :  { %543 = vmatpush3.bf16.msra.mxu1 %v542_v23 }
  0x98   :  { %544 = vmatprep.subr.bf16.mxu1 %v782_v0 }
  0x99   :  { %564 = vmatpush3.bf16.msra.mxu0 %v563_v44 }
  0x9a   :  { %565 = vmatprep.subr.bf16.mxu0 %v782_v0 }
  0x9b   :  { %546 = vmatpush3.bf16.msra.mxu1 %v545_v26 }
  0x9c   :  { %547 = vmatprep.subr.bf16.mxu1 %v782_v0 }
  0x9d   :  { %567 = vmatpush3.bf16.msra.mxu0 %v566_v47 }
  0x9e   :  { %568 = vmatprep.subr.bf16.mxu0 %v782_v0 }
  0x9f   :  { %549 = vmatpush3.bf16.msra.mxu1 %v548_v29 }
  0xa1   :  { %570 = vmatpush3.bf16.msra.mxu0 %v569_v50 }
  0xa2   :  { %571 = vmatprep.subr.bf16.mxu0 %v782_v0 }
  0xa5   :  { %573 = vmatpush3.bf16.msra.mxu0 %v572_v58 }
 0x159   :  { %v194_v52 = vpop.f32.mrb[0].mxu0 }
 0x15a   :  { %v195_v53 = vadd.f32 %v405_v51, %v194_v52  ;;  %v452_v54 = vpop.f32.mrb[1].mxu0 }
 0x15c   :  { %v198_v55 = vmax.f32 %v195_v53, 0.0 }
 0x15e   :  { %486 = vmatmul.mubr.f32.vlgmr.msra.gmra.mrb[0].mxu1 %v198_v55 }
 0x231   :  { %v288_v60 = vpop.f32.mrb[0].mxu1 }
 0x232   :  { %v289_v61 = vadd.f32 %v407_v59, %v288_v60  ;;  %v487_v62 = vpop.f32.mrb[1].mxu1 }
 0x234   :  { %v292_v63 = vmax.f32 %v289_v61, 0.0 }
 0x236   :  { %521 = vmatmul.mubr.f32.vlgmr.msra.gmra.mrb[2].mxu0 %v292_v63 }
 0x309   :  { %v382_v0 = vpop.f32.mrb[2].mxu0 }
 0x30a   :  { %v383_v2 = vadd.f32 %v408_v1, %v382_v0  ;;  %v522_v3 = vpop.f32.mrb[3].mxu0 }
 0x30c   :  { %386 = vst [vmem:[#allocation14] sm:$0xff] %v383_v2 }
 0x30d   :  { %752 = shalt.err (!%p749_p4)
}
 0x30e   :  { %s753_s15 = scalar_lea.hbm %s958_s7, 128 }
 0x30f   :  { %p754_p5 = scmp.ne.s32.totalorder %s958_s7, %s753_s15  ;;  %p757_p6 = scmp.lt.u32.totalorder %s753_s15, %s958_s7 }
 0x311   :  { %p759_p7 = pnand %p757_p6, %p754_p5 }
 0x313   :  { %762 = shalt.err (!%p759_p7)
}
 0x314   :  { %396 = dma.vmem_to_hbm [thread:$0]  %s394_s13, 128, %s958_s7, [#allocation4]  }
 0x315   :  { %771 = dma.done.wait [#allocation4], 128  }
 0x316   :  { %772 = vsyncadd [#allocation4], 4294967168 }
 0x317   :  { %400 = vsyncpa [#allocation3], 1 }
 0x318   :  { %401 = vsyncpa [#allocation6], 1 }
 0x319   :  { %402 = vsyncpa [#allocation9], 1 }
 0x31a   :  { %403 = vsyncpa [#allocation12], 1 }
 0x31b   :  { %404 = vsyncpa [#allocation4], 1 }

</bundles_post_ra>
